<compile_context>
chip_gen: v7x
topology: tpu7x:2x2x1
jax: 0.10.0
libtpu: 0.0.40
codegen_flags: <defaults>
</compile_context>

<pallas_src>
import math

import jax
import jax.numpy as jnp
from jax.experimental import pallas as pl
from jax.experimental.pallas import tpu as pltpu


def _sigmoid(x):
    # exp-based sigmoid: identical math in kernel and reference.
    return 1.0 / (1.0 + jnp.exp(-x))


# -----------------------------------------------------------------------------
# Kernel: one batch tile does the whole forward pass.
# -----------------------------------------------------------------------------
def _fused_kernel(len_ref, invt_ref, ximg_ref, xtxt_ref,
                  wi1_ref, bi1_ref, wi2_ref, bi2_ref,
                  wih_ref, bih_ref, whh_ref, bhh_ref,
                  wc1_ref, bc1_ref, wc2_ref, bc2_ref,
                  preds_ref, xmm_ref,
                  gi_scr):
    f32 = jnp.float32
    bf16 = jnp.bfloat16

    tb = ximg_ref.shape[0]                 # batch tile size
    t_total = xtxt_ref.shape[0] // tb      # padded sequence length
    hd = wi2_ref.shape[1]                  # d_hid (= GRU hidden size)

    # ---- image projection: Linear -> ReLU -> Dropout(eval no-op) -> Linear
    x0 = ximg_ref[...]                                                  # bf16 [tb, IMG_D]
    h1 = jnp.dot(x0, wi1_ref[...], preferred_element_type=f32) + bi1_ref[...]
    h1 = jnp.maximum(h1, 0.0)                                           # f32 [tb, 128]
    h_img = (jnp.dot(h1.astype(bf16), wi2_ref[...], preferred_element_type=f32)
             + bi2_ref[...])                                            # f32 [tb, hd]

    # ---- GRU input->hidden gates for all timesteps in ONE big MXU matmul.
    # xtxt_ref rows are (t, b_local) row-major, i.e. row = t*tb + b_local.
    gi_all = (jnp.dot(xtxt_ref[...], wih_ref[...], preferred_element_type=f32)
              + bih_ref[...])                                           # f32 [T*tb, 3hd]
    gi_scr[...] = gi_all

    # ---- GRU recurrence (PyTorch gate order r, z, n) + length-masked sum.
    whh = whh_ref[...]
    bhh = bhh_ref[...]
    lens = len_ref[...]                                                 # int32 [tb, 1]

    def gru_step(t, carry):
        h_prev, acc = carry                                             # f32 [tb, hd]
        row0 = pl.multiple_of(t * tb, 8)
        gi = gi_scr[pl.ds(row0, tb), :]                                 # f32 [tb, 3hd]
        gh = jnp.dot(h_prev.astype(bf16), whh, preferred_element_type=f32) + bhh
        r = _sigmoid(gi[:, 0:hd] + gh[:, 0:hd])
        z = _sigmoid(gi[:, hd:2 * hd] + gh[:, hd:2 * hd])
        n = jnp.tanh(gi[:, 2 * hd:3 * hd] + r * gh[:, 2 * hd:3 * hd])
        h_new = (1.0 - z) * n + z * h_prev
        mask = (t < lens).astype(f32)                                   # [tb, 1]
        return h_new, acc + mask * h_new

    zeros = jnp.zeros((tb, hd), f32)
    _, acc = jax.lax.fori_loop(0, t_total, gru_step, (zeros, zeros))
    # torch.mean over the pad_packed_sequence output => divide by max(len_t).
    text_mean = acc * invt_ref[...]                                     # (1,1) broadcast

    # ---- fuse + classifier head
    x_mm = jnp.concatenate([h_img, text_mean], axis=1)                  # f32 [tb, 2hd]
    xmm_ref[...] = x_mm.astype(xmm_ref.dtype)

    c1 = (jnp.dot(x_mm.astype(bf16), wc1_ref[...], preferred_element_type=f32)
          + bc1_ref[...])
    c1 = jnp.maximum(c1, 0.0)                                           # f32 [tb, 128]
    preds = (jnp.dot(c1.astype(bf16), wc2_ref[...], preferred_element_type=f32)
             + bc2_ref[...])                                            # f32 [tb, 128]
    preds_ref[...] = preds.astype(preds_ref.dtype)


# -----------------------------------------------------------------------------
# Wrapper
# -----------------------------------------------------------------------------
def _round_up(x, m):
    return (x + m - 1) // m * m


def image_text_classifier_forward(kparams, x_img, x_text, len_t, *, num_classes):
    """Default (en_att=False) forward of ImageTextClassifier. Returns (preds, x_mm)."""
    f32, bf16 = jnp.float32, jnp.bfloat16
    B = x_img.shape[0]
    T = x_text.shape[1]
    img_d = x_img.shape[2]
    txt_d = x_text.shape[2]
    d_hid = kparams["wi2"].shape[1]
    c_pad = kparams["wc2"].shape[1]

    # Batch tile: multiple of 16 (bf16 sublane packing), capped at 128 (MXU M).
    tile_b = max(16, min(128, _round_up(B, 16)))
    num_tiles = pl.cdiv(B, tile_b)
    b_pad = num_tiles * tile_b
    pad = b_pad - B

    # pad_packed_sequence output length = max(len_t); torch.mean divides by it.
    # TODO(synk): len_t[0] == 0 branch of the module (no packing, mean over full T)
    # is not modelled; inputs here always take the packed path.
    lens_i32 = len_t.astype(jnp.int32)
    eff_t = jnp.maximum(jnp.max(lens_i32), 1)
    inv_t = (1.0 / eff_t.astype(f32)).reshape(1, 1)                       # (1,1) f32

    x_img0 = jnp.pad(x_img[:, 0, :].astype(f32), ((0, pad), (0, 0))).astype(bf16)

    # x_text: [B,T,D] -> time-major, per-batch-tile contiguous rows
    # [num_tiles * T * tile_b, D]; row within a tile = t*tile_b + b_local.
    x_text_f = jnp.pad(x_text.astype(f32), ((0, pad), (0, 0), (0, 0)))   # [b_pad,T,D]
    x_text_tm = jnp.transpose(x_text_f, (1, 0, 2))                        # [T,b_pad,D]
    x_text_flat = (jnp.transpose(
        x_text_tm.reshape(T, num_tiles, tile_b, txt_d), (1, 0, 2, 3))
        .reshape(num_tiles * T * tile_b, txt_d).astype(bf16))

    lens = jnp.pad(lens_i32[:, None], ((0, pad), (0, 0)))                 # [b_pad, 1]

    def resident(arr):
        return pl.BlockSpec(arr.shape, lambda i, nd=arr.ndim: (0,) * nd)

    in_specs = [
        pl.BlockSpec((tile_b, 1), lambda i: (i, 0)),               # lens
        pl.BlockSpec((1, 1), lambda i: (0, 0)),                    # 1/max(len_t)
        pl.BlockSpec((tile_b, img_d), lambda i: (i, 0)),           # x_img[:, 0, :]
        pl.BlockSpec((T * tile_b, txt_d), lambda i: (i, 0)),       # x_text (flattened)
        resident(kparams["wi1"]), resident(kparams["bi1"]),
        resident(kparams["wi2"]), resident(kparams["bi2"]),
        resident(kparams["wih"]), resident(kparams["bih"]),
        resident(kparams["whh"]), resident(kparams["bhh"]),
        resident(kparams["wc1"]), resident(kparams["bc1"]),
        resident(kparams["wc2"]), resident(kparams["bc2"]),
    ]
    out_specs = (
        pl.BlockSpec((tile_b, c_pad), lambda i: (i, 0)),           # lane-dense logits
        pl.BlockSpec((tile_b, 2 * d_hid), lambda i: (i, 0)),       # x_mm (128 wide)
    )
    out_shape = (
        jax.ShapeDtypeStruct((b_pad, c_pad), f32),
        jax.ShapeDtypeStruct((b_pad, 2 * d_hid), f32),
    )

    preds_pad, xmm_pad = pl.pallas_call(
        _fused_kernel,
        grid=(num_tiles,),
        in_specs=in_specs,
        out_specs=out_specs,
        out_shape=out_shape,
        scratch_shapes=[pltpu.VMEM((T * tile_b, 3 * d_hid), jnp.float32)],
        compiler_params=pltpu.CompilerParams(
            dimension_semantics=("parallel",),
            vmem_limit_bytes=32 * 1024 * 1024,
        ),
    )(lens, inv_t, x_img0, x_text_flat,
      kparams["wi1"], kparams["bi1"], kparams["wi2"], kparams["bi2"],
      kparams["wih"], kparams["bih"], kparams["whh"], kparams["bhh"],
      kparams["wc1"], kparams["bc1"], kparams["wc2"], kparams["bc2"])

    return preds_pad[:B, :num_classes], xmm_pad[:B, :]


# -----------------------------------------------------------------------------
# Parameter construction (deterministic, PyTorch-default-style init)
# -----------------------------------------------------------------------------
def init_module_params(key, img_input_dim, text_input_dim, d_hid, num_classes,
                       clf_hidden=64):
    """f32 params in [in, out] layout (PyTorch W^T); uniform(+/- 1/sqrt(fan_in))."""
    ks = jax.random.split(key, 12)

    def u(k, shape, bound):
        return jax.random.uniform(k, shape, jnp.float32, -bound, bound)

    def linear(kw, kb, fan_in, fan_out):
        b = 1.0 / math.sqrt(fan_in)
        return u(kw, (fan_in, fan_out), b), u(kb, (1, fan_out), b)

    p = {}
    p["wi1"], p["bi1"] = linear(ks[0], ks[1], img_input_dim, d_hid)     # img_proj.0
    p["wi2"], p["bi2"] = linear(ks[2], ks[3], d_hid, d_hid)             # img_proj.3
    gb = 1.0 / math.sqrt(d_hid)
    p["wih"] = u(ks[4], (text_input_dim, 3 * d_hid), gb)                # GRU (r,z,n)
    p["whh"] = u(ks[5], (d_hid, 3 * d_hid), gb)
    p["bih"] = u(ks[6], (1, 3 * d_hid), gb)
    p["bhh"] = u(ks[7], (1, 3 * d_hid), gb)
    p["wc1"], p["bc1"] = linear(ks[8], ks[9], 2 * d_hid, clf_hidden)    # classifier.0
    p["wc2"], p["bc2"] = linear(ks[10], ks[11], clf_hidden, num_classes)  # classifier.3
    return p


def prepare_kernel_params(p, *, hidden_pad=128, class_pad=128):
    """bf16 matmul weights (biases stay f32), zero-padded to lane-dense widths."""
    bf16 = jnp.bfloat16

    def pad_cols(a, n):
        return jnp.pad(a, ((0, 0), (0, n - a.shape[1])))

    def pad_rows(a, n):
        return jnp.pad(a, ((0, n - a.shape[0]), (0, 0)))

    return {
        "wi1": pad_cols(p["wi1"], hidden_pad).astype(bf16),
        "bi1": pad_cols(p["bi1"], hidden_pad),
        "wi2": pad_rows(p["wi2"], hidden_pad).astype(bf16),
        "bi2": p["bi2"],
        "wih": p["wih"].astype(bf16),
        "bih": p["bih"],
        "whh": p["whh"].astype(bf16),
        "bhh": p["bhh"],
        "wc1": pad_cols(p["wc1"], hidden_pad).astype(bf16),
        "bc1": pad_cols(p["bc1"], hidden_pad),
        "wc2": pad_cols(pad_rows(p["wc2"], hidden_pad), class_pad).astype(bf16),
        "bc2": pad_cols(p["bc2"], class_pad),
    }


# -----------------------------------------------------------------------------
# Pure-JAX reference (same bf16-operand / f32-accumulate math as the kernel)
# -----------------------------------------------------------------------------
def reference_forward(p, x_img, x_text, len_t):
    f32, bf16 = jnp.float32, jnp.bfloat16

    def mm(a, w):
        return jnp.dot(a.astype(bf16), w.astype(bf16), preferred_element_type=f32)

    x0 = x_img[:, 0, :]
    h1 = jnp.maximum(mm(x0, p["wi1"]) + p["bi1"], 0.0)
    h_img = mm(h1, p["wi2"]) + p["bi2"]

    B, T, _ = x_text.shape
    H = p["wi2"].shape[1]
    h = jnp.zeros((B, H), f32)
    acc = jnp.zeros((B, H), f32)
    for t in range(T):
        gi = mm(x_text[:, t, :], p["wih"]) + p["bih"]
        gh = mm(h, p["whh"]) + p["bhh"]
        r = _sigmoid(gi[:, :H] + gh[:, :H])
        z = _sigmoid(gi[:, H:2 * H] + gh[:, H:2 * H])
        n = jnp.tanh(gi[:, 2 * H:] + r * gh[:, 2 * H:])
        h = (1.0 - z) * n + z * h
        mask = (t < len_t).astype(f32)[:, None]
        acc = acc + mask * h
    # pad_packed_sequence output length == max(len_t); torch.mean divides by it.
    text_mean = acc / jnp.maximum(jnp.max(len_t), 1).astype(f32)

    x_mm = jnp.concatenate([h_img, text_mean], axis=1)
    c1 = jnp.maximum(mm(x_mm, p["wc1"]) + p["bc1"], 0.0)
    preds = mm(c1, p["wc2"]) + p["bc2"]
    return preds, x_mm


if __name__ == "__main__":
    batch = 2
    num_img_tokens = 3
    img_input_dim = 32
    text_input_dim = 16
    seq_len = 8
    d_hid = 64
    num_classes = 10

    key = jax.random.PRNGKey(0)
    k_img, k_txt, k_par = jax.random.split(key, 3)

    x_img = jax.random.normal(k_img, (batch, num_img_tokens, img_input_dim), jnp.float32)
    x_text = jax.random.normal(k_txt, (batch, seq_len, text_input_dim), jnp.float32)
    len_t = jnp.array([7, 5], dtype=jnp.int32)              # packed path (len_t[0] != 0)
    len_i = jnp.array([num_img_tokens] * batch, jnp.int32)  # unused on en_att=False path

    params = init_module_params(k_par, img_input_dim, text_input_dim, d_hid, num_classes)
    kparams = prepare_kernel_params(params)

    # TODO(synk): en_att=True 'fuse_base' attention + adapter path not implemented
    # (module default en_att=False -> mean+concat branch is what runs here).
    preds, x_mm = image_text_classifier_forward(
        kparams, x_img, x_text, len_t, num_classes=num_classes)
    preds, x_mm = jax.block_until_ready((preds, x_mm))

    ref_preds, ref_xmm = reference_forward(params, x_img, x_text, len_t)

    assert preds.shape == (batch, num_classes)
    assert x_mm.shape == (batch, 2 * d_hid)
    assert jnp.allclose(preds, ref_preds, atol=1e-2, rtol=1e-2), \
        float(jnp.max(jnp.abs(preds - ref_preds)))
    assert jnp.allclose(x_mm, ref_xmm, atol=1e-2, rtol=1e-2), \
        float(jnp.max(jnp.abs(x_mm - ref_xmm)))

    print("KERNEL_OK")
</pallas_src>

<mosaic_0001>
module attributes {stable_mosaic.version = 11 : i64} {
  func.func @_fused_kernel(%arg0: i32, %arg1: memref<16x1xi32, #tpu.memory_space<vmem>>, %arg2: memref<1x1xf32, #tpu.memory_space<vmem>>, %arg3: memref<16x32xbf16, #tpu.memory_space<vmem>>, %arg4: memref<128x16xbf16, #tpu.memory_space<vmem>>, %arg5: memref<32x128xbf16, #tpu.memory_space<vmem>>, %arg6: memref<1x128xf32, #tpu.memory_space<vmem>>, %arg7: memref<128x64xbf16, #tpu.memory_space<vmem>>, %arg8: memref<1x64xf32, #tpu.memory_space<vmem>>, %arg9: memref<16x192xbf16, #tpu.memory_space<vmem>>, %arg10: memref<1x192xf32, #tpu.memory_space<vmem>>, %arg11: memref<64x192xbf16, #tpu.memory_space<vmem>>, %arg12: memref<1x192xf32, #tpu.memory_space<vmem>>, %arg13: memref<128x128xbf16, #tpu.memory_space<vmem>>, %arg14: memref<1x128xf32, #tpu.memory_space<vmem>>, %arg15: memref<128x128xbf16, #tpu.memory_space<vmem>>, %arg16: memref<1x128xf32, #tpu.memory_space<vmem>>, %arg17: memref<16x128xf32, #tpu.memory_space<vmem>>, %arg18: memref<16x128xf32, #tpu.memory_space<vmem>>, %arg19: memref<128x192xf32, #tpu.memory_space<vmem>>) attributes {dimension_semantics = [#tpu.dimension_semantics<parallel>], iteration_bounds = array<i64: 1>, scalar_prefetch = 0 : i64, scratch_operands = 1 : i64, tpu.core_type = #tpu.core_type<tc>, window_params = [{transform_indices = @transform_0, window_bounds = array<i64: 16, 1>}, {pipeline_mode = #tpu.pipeline_mode<synchronous>, transform_indices = @transform_1, window_bounds = array<i64: 1, 1>}, {transform_indices = @transform_2, window_bounds = array<i64: 16, 32>}, {transform_indices = @transform_3, window_bounds = array<i64: 128, 16>}, {pipeline_mode = #tpu.pipeline_mode<synchronous>, transform_indices = @transform_4, window_bounds = array<i64: 32, 128>}, {pipeline_mode = #tpu.pipeline_mode<synchronous>, transform_indices = @transform_5, window_bounds = array<i64: 1, 128>}, {pipeline_mode = #tpu.pipeline_mode<synchronous>, transform_indices = @transform_6, window_bounds = array<i64: 128, 64>}, {pipeline_mode = #tpu.pipeline_mode<synchronous>, transform_indices = @transform_7, window_bounds = array<i64: 1, 64>}, {pipeline_mode = #tpu.pipeline_mode<synchronous>, transform_indices = @transform_8, window_bounds = array<i64: 16, 192>}, {pipeline_mode = #tpu.pipeline_mode<synchronous>, transform_indices = @transform_9, window_bounds = array<i64: 1, 192>}, {pipeline_mode = #tpu.pipeline_mode<synchronous>, transform_indices = @transform_10, window_bounds = array<i64: 64, 192>}, {pipeline_mode = #tpu.pipeline_mode<synchronous>, transform_indices = @transform_11, window_bounds = array<i64: 1, 192>}, {pipeline_mode = #tpu.pipeline_mode<synchronous>, transform_indices = @transform_12, window_bounds = array<i64: 128, 128>}, {pipeline_mode = #tpu.pipeline_mode<synchronous>, transform_indices = @transform_13, window_bounds = array<i64: 1, 128>}, {pipeline_mode = #tpu.pipeline_mode<synchronous>, transform_indices = @transform_14, window_bounds = array<i64: 128, 128>}, {pipeline_mode = #tpu.pipeline_mode<synchronous>, transform_indices = @transform_15, window_bounds = array<i64: 1, 128>}, {transform_indices = @transform_16, window_bounds = array<i64: 16, 128>}, {transform_indices = @transform_17, window_bounds = array<i64: 16, 128>}]} {
    %c0 = arith.constant 0 : index
    %c0_0 = arith.constant 0 : index
    %0 = vector.load %arg3[%c0, %c0_0] : memref<16x32xbf16, #tpu.memory_space<vmem>>, vector<16x32xbf16>
    %c0_1 = arith.constant 0 : index
    %c0_2 = arith.constant 0 : index
    %1 = vector.load %arg5[%c0_1, %c0_2] : memref<32x128xbf16, #tpu.memory_space<vmem>>, vector<32x128xbf16>
    %cst = arith.constant dense<0.000000e+00> : vector<16x128xf32>
    %2 = tpu.matmul %0, %1, %cst {dimension_numbers = #tpu.dot_dimension_numbers<[1], [0], [0], [1], [0, 0, 1, 1], [], []>} : vector<16x32xbf16>, vector<32x128xbf16>, vector<16x128xf32> -> vector<16x128xf32>
    %c0_3 = arith.constant 0 : index
    %c0_4 = arith.constant 0 : index
    %3 = vector.load %arg6[%c0_3, %c0_4] : memref<1x128xf32, #tpu.memory_space<vmem>>, vector<1x128xf32>
    %4 = vector.broadcast %3 : vector<1x128xf32> to vector<16x128xf32>
    %5 = arith.addf %2, %4 : vector<16x128xf32>
    %cst_5 = arith.constant 0.000000e+00 : f32
    %6 = vector.broadcast %cst_5 : f32 to vector<16x128xf32>
    %7 = arith.maximumf %5, %6 : vector<16x128xf32>
    %8 = arith.truncf %7 : vector<16x128xf32> to vector<16x128xbf16>
    %c0_6 = arith.constant 0 : index
    %c0_7 = arith.constant 0 : index
    %9 = vector.load %arg7[%c0_6, %c0_7] : memref<128x64xbf16, #tpu.memory_space<vmem>>, vector<128x64xbf16>
    %cst_8 = arith.constant dense<0.000000e+00> : vector<16x64xf32>
    %10 = tpu.matmul %8, %9, %cst_8 {dimension_numbers = #tpu.dot_dimension_numbers<[1], [0], [0], [1], [0, 0, 1, 1], [], []>} : vector<16x128xbf16>, vector<128x64xbf16>, vector<16x64xf32> -> vector<16x64xf32>
    %c0_9 = arith.constant 0 : index
    %c0_10 = arith.constant 0 : index
    %11 = vector.load %arg8[%c0_9, %c0_10] : memref<1x64xf32, #tpu.memory_space<vmem>>, vector<1x64xf32>
    %12 = vector.broadcast %11 : vector<1x64xf32> to vector<16x64xf32>
    %13 = arith.addf %10, %12 : vector<16x64xf32>
    %c0_11 = arith.constant 0 : index
    %c0_12 = arith.constant 0 : index
    %14 = vector.load %arg4[%c0_11, %c0_12] : memref<128x16xbf16, #tpu.memory_space<vmem>>, vector<128x16xbf16>
    %c0_13 = arith.constant 0 : index
    %c0_14 = arith.constant 0 : index
    %15 = vector.load %arg9[%c0_13, %c0_14] : memref<16x192xbf16, #tpu.memory_space<vmem>>, vector<16x192xbf16>
    %cst_15 = arith.constant dense<0.000000e+00> : vector<128x192xf32>
    %16 = tpu.matmul %14, %15, %cst_15 {dimension_numbers = #tpu.dot_dimension_numbers<[1], [0], [0], [1], [0, 0, 1, 1], [], []>} : vector<128x16xbf16>, vector<16x192xbf16>, vector<128x192xf32> -> vector<128x192xf32>
    %c0_16 = arith.constant 0 : index
    %c0_17 = arith.constant 0 : index
    %17 = vector.load %arg10[%c0_16, %c0_17] : memref<1x192xf32, #tpu.memory_space<vmem>>, vector<1x192xf32>
    %18 = vector.broadcast %17 : vector<1x192xf32> to vector<128x192xf32>
    %19 = arith.addf %16, %18 : vector<128x192xf32>
    %c0_18 = arith.constant 0 : index
    %c0_19 = arith.constant 0 : index
    %20 = vector.load %arg19[%c0_18, %c0_19] : memref<128x192xf32, #tpu.memory_space<vmem>>, vector<128x192xf32>
    tpu.vector_store %arg19[%c0_18, %c0_19], %19 {strides = array<i32>} : memref<128x192xf32, #tpu.memory_space<vmem>>, vector<128x192xf32>,
    %c0_20 = arith.constant 0 : index
    %c0_21 = arith.constant 0 : index
    %21 = vector.load %arg11[%c0_20, %c0_21] : memref<64x192xbf16, #tpu.memory_space<vmem>>, vector<64x192xbf16>
    %c0_22 = arith.constant 0 : index
    %c0_23 = arith.constant 0 : index
    %22 = vector.load %arg12[%c0_22, %c0_23] : memref<1x192xf32, #tpu.memory_space<vmem>>, vector<1x192xf32>
    %c0_24 = arith.constant 0 : index
    %c0_25 = arith.constant 0 : index
    %23 = vector.load %arg1[%c0_24, %c0_25] : memref<16x1xi32, #tpu.memory_space<vmem>>, vector<16x1xi32>
    %cst_26 = arith.constant 0.000000e+00 : f32
    %24 = vector.broadcast %cst_26 : f32 to vector<16x64xf32>
    %c0_i32 = arith.constant 0 : i32
    %c8_i32 = arith.constant 8 : i32
    %25 = arith.addi %c0_i32, %c8_i32 : i32
    %c1_i32 = arith.constant 1 : i32
    %26:2 = scf.for %arg20 = %c0_i32 to %25 step %c1_i32 iter_args(%arg21 = %24, %arg22 = %24) -> (vector<16x64xf32>, vector<16x64xf32>)  : i32 {
      %c16_i32 = arith.constant 16 : i32
      %47 = arith.muli %arg20, %c16_i32 : i32
      %48 = tpu.assume_multiple %47, 8 : i32
      %49 = arith.index_cast %48 : i32 to index
      %c0_45 = arith.constant 0 : index
      %50 = vector.load %arg19[%49, %c0_45] : memref<128x192xf32, #tpu.memory_space<vmem>>, vector<16x192xf32>
      %51 = arith.truncf %arg21 : vector<16x64xf32> to vector<16x64xbf16>
      %cst_46 = arith.constant dense<0.000000e+00> : vector<16x192xf32>
      %52 = tpu.matmul %51, %21, %cst_46 {dimension_numbers = #tpu.dot_dimension_numbers<[1], [0], [0], [1], [0, 0, 1, 1], [], []>} : vector<16x64xbf16>, vector<64x192xbf16>, vector<16x192xf32> -> vector<16x192xf32>
      %53 = vector.broadcast %22 : vector<1x192xf32> to vector<16x192xf32>
      %54 = arith.addf %52, %53 : vector<16x192xf32>
      %55 = vector.extract_strided_slice %50 {offsets = [0, 0], sizes = [16, 64], strides = [1, 1]} : vector<16x192xf32> to vector<16x64xf32>
      %56 = vector.extract_strided_slice %54 {offsets = [0, 0], sizes = [16, 64], strides = [1, 1]} : vector<16x192xf32> to vector<16x64xf32>
      %57 = arith.addf %55, %56 : vector<16x64xf32>
      %cst_47 = arith.constant 0.000000e+00 : f32
      %58 = vector.broadcast %cst_47 : f32 to vector<16x64xf32>
      %59 = arith.subf %58, %57 : vector<16x64xf32>
      %60 = math.exp %59 : vector<16x64xf32>
      %cst_48 = arith.constant 1.000000e+00 : f32
      %61 = vector.broadcast %cst_48 : f32 to vector<16x64xf32>
      %62 = arith.addf %61, %60 : vector<16x64xf32>
      %cst_49 = arith.constant 1.000000e+00 : f32
      %63 = vector.broadcast %cst_49 : f32 to vector<16x64xf32>
      %64 = arith.divf %63, %62 : vector<16x64xf32>
      %65 = vector.extract_strided_slice %50 {offsets = [0, 64], sizes = [16, 64], strides = [1, 1]} : vector<16x192xf32> to vector<16x64xf32>
      %66 = vector.extract_strided_slice %54 {offsets = [0, 64], sizes = [16, 64], strides = [1, 1]} : vector<16x192xf32> to vector<16x64xf32>
      %67 = arith.addf %65, %66 : vector<16x64xf32>
      %cst_50 = arith.constant 0.000000e+00 : f32
      %68 = vector.broadcast %cst_50 : f32 to vector<16x64xf32>
      %69 = arith.subf %68, %67 : vector<16x64xf32>
      %70 = math.exp %69 : vector<16x64xf32>
      %cst_51 = arith.constant 1.000000e+00 : f32
      %71 = vector.broadcast %cst_51 : f32 to vector<16x64xf32>
      %72 = arith.addf %71, %70 : vector<16x64xf32>
      %cst_52 = arith.constant 1.000000e+00 : f32
      %73 = vector.broadcast %cst_52 : f32 to vector<16x64xf32>
      %74 = arith.divf %73, %72 : vector<16x64xf32>
      %75 = vector.extract_strided_slice %50 {offsets = [0, 128], sizes = [16, 64], strides = [1, 1]} : vector<16x192xf32> to vector<16x64xf32>
      %76 = vector.extract_strided_slice %54 {offsets = [0, 128], sizes = [16, 64], strides = [1, 1]} : vector<16x192xf32> to vector<16x64xf32>
      %77 = arith.mulf %64, %76 : vector<16x64xf32>
      %78 = arith.addf %75, %77 : vector<16x64xf32>
      %79 = math.tanh %78 : vector<16x64xf32>
      %cst_53 = arith.constant 1.000000e+00 : f32
      %80 = vector.broadcast %cst_53 : f32 to vector<16x64xf32>
      %81 = arith.subf %80, %74 : vector<16x64xf32>
      %82 = arith.mulf %81, %79 : vector<16x64xf32>
      %83 = arith.mulf %74, %arg21 : vector<16x64xf32>
      %84 = arith.addf %82, %83 : vector<16x64xf32>
      %85 = vector.broadcast %arg20 : i32 to vector<16x1xi32>
      %86 = arith.cmpi slt, %85, %23 : vector<16x1xi32>
      %87 = arith.extui %86 : vector<16x1xi1> to vector<16x1xi32>
      %88 = arith.sitofp %87 : vector<16x1xi32> to vector<16x1xf32>
      %89 = vector.broadcast %88 : vector<16x1xf32> to vector<16x64xf32>
      %90 = arith.mulf %89, %84 : vector<16x64xf32>
      %91 = arith.addf %arg22, %90 : vector<16x64xf32>
      scf.yield %84, %91 : vector<16x64xf32>, vector<16x64xf32>
    }
    %c8_i32_27 = arith.constant 8 : i32
    %c0_28 = arith.constant 0 : index
    %c0_29 = arith.constant 0 : index
    %27 = vector.load %arg2[%c0_28, %c0_29] : memref<1x1xf32, #tpu.memory_space<vmem>>, vector<1x1xf32>
    %28 = vector.broadcast %27 : vector<1x1xf32> to vector<16x64xf32>
    %29 = arith.mulf %26#1, %28 : vector<16x64xf32>
    %30 = tpu.concatenate %13, %29 in 1 : vector<16x64xf32>, vector<16x64xf32> -> vector<16x128xf32>
    %c0_30 = arith.constant 0 : index
    %c0_31 = arith.constant 0 : index
    %31 = vector.load %arg18[%c0_30, %c0_31] : memref<16x128xf32, #tpu.memory_space<vmem>>, vector<16x128xf32>
    tpu.vector_store %arg18[%c0_30, %c0_31], %30 {strides = array<i32>} : memref<16x128xf32, #tpu.memory_space<vmem>>, vector<16x128xf32>,
    %32 = arith.truncf %30 : vector<16x128xf32> to vector<16x128xbf16>
    %c0_32 = arith.constant 0 : index
    %c0_33 = arith.constant 0 : index
    %33 = vector.load %arg13[%c0_32, %c0_33] : memref<128x128xbf16, #tpu.memory_space<vmem>>, vector<128x128xbf16>
    %cst_34 = arith.constant dense<0.000000e+00> : vector<16x128xf32>
    %34 = tpu.matmul %32, %33, %cst_34 {dimension_numbers = #tpu.dot_dimension_numbers<[1], [0], [0], [1], [0, 0, 1, 1], [], []>} : vector<16x128xbf16>, vector<128x128xbf16>, vector<16x128xf32> -> vector<16x128xf32>
    %c0_35 = arith.constant 0 : index
    %c0_36 = arith.constant 0 : index
    %35 = vector.load %arg14[%c0_35, %c0_36] : memref<1x128xf32, #tpu.memory_space<vmem>>, vector<1x128xf32>
    %36 = vector.broadcast %35 : vector<1x128xf32> to vector<16x128xf32>
    %37 = arith.addf %34, %36 : vector<16x128xf32>
    %cst_37 = arith.constant 0.000000e+00 : f32
    %38 = vector.broadcast %cst_37 : f32 to vector<16x128xf32>
    %39 = arith.maximumf %37, %38 : vector<16x128xf32>
    %40 = arith.truncf %39 : vector<16x128xf32> to vector<16x128xbf16>
    %c0_38 = arith.constant 0 : index
    %c0_39 = arith.constant 0 : index
    %41 = vector.load %arg15[%c0_38, %c0_39] : memref<128x128xbf16, #tpu.memory_space<vmem>>, vector<128x128xbf16>
    %cst_40 = arith.constant dense<0.000000e+00> : vector<16x128xf32>
    %42 = tpu.matmul %40, %41, %cst_40 {dimension_numbers = #tpu.dot_dimension_numbers<[1], [0], [0], [1], [0, 0, 1, 1], [], []>} : vector<16x128xbf16>, vector<128x128xbf16>, vector<16x128xf32> -> vector<16x128xf32>
    %c0_41 = arith.constant 0 : index
    %c0_42 = arith.constant 0 : index
    %43 = vector.load %arg16[%c0_41, %c0_42] : memref<1x128xf32, #tpu.memory_space<vmem>>, vector<1x128xf32>
    %44 = vector.broadcast %43 : vector<1x128xf32> to vector<16x128xf32>
    %45 = arith.addf %42, %44 : vector<16x128xf32>
    %c0_43 = arith.constant 0 : index
    %c0_44 = arith.constant 0 : index
    %46 = vector.load %arg17[%c0_43, %c0_44] : memref<16x128xf32, #tpu.memory_space<vmem>>, vector<16x128xf32>
    tpu.vector_store %arg17[%c0_43, %c0_44], %45 {strides = array<i32>} : memref<16x128xf32, #tpu.memory_space<vmem>>, vector<16x128xf32>,
    return
  }
  func.func @transform_0(%arg0: i32) -> (i32, i32) {
    %c0_i32 = arith.constant 0 : i32
    %c0_i32_0 = arith.constant 0 : i32
    return %arg0, %c0_i32 : i32, i32
  }
  func.func @transform_1(%arg0: i32) -> (i32, i32) {
    %c0_i32 = arith.constant 0 : i32
    %c0_i32_0 = arith.constant 0 : i32
    %c0_i32_1 = arith.constant 0 : i32
    return %c0_i32, %c0_i32_0 : i32, i32
  }
  func.func @transform_2(%arg0: i32) -> (i32, i32) {
    %c0_i32 = arith.constant 0 : i32
    %c0_i32_0 = arith.constant 0 : i32
    return %arg0, %c0_i32 : i32, i32
  }
  func.func @transform_3(%arg0: i32) -> (i32, i32) {
    %c0_i32 = arith.constant 0 : i32
    %c0_i32_0 = arith.constant 0 : i32
    return %arg0, %c0_i32 : i32, i32
  }
  func.func @transform_4(%arg0: i32) -> (i32, i32) {
    %c0_i32 = arith.constant 0 : i32
    %c0_i32_0 = arith.constant 0 : i32
    %c0_i32_1 = arith.constant 0 : i32
    return %c0_i32, %c0_i32_0 : i32, i32
  }
  func.func @transform_5(%arg0: i32) -> (i32, i32) {
    %c0_i32 = arith.constant 0 : i32
    %c0_i32_0 = arith.constant 0 : i32
    %c0_i32_1 = arith.constant 0 : i32
    return %c0_i32, %c0_i32_0 : i32, i32
  }
  func.func @transform_6(%arg0: i32) -> (i32, i32) {
    %c0_i32 = arith.constant 0 : i32
    %c0_i32_0 = arith.constant 0 : i32
    %c0_i32_1 = arith.constant 0 : i32
    return %c0_i32, %c0_i32_0 : i32, i32
  }
  func.func @transform_7(%arg0: i32) -> (i32, i32) {
    %c0_i32 = arith.constant 0 : i32
    %c0_i32_0 = arith.constant 0 : i32
    %c0_i32_1 = arith.constant 0 : i32
    return %c0_i32, %c0_i32_0 : i32, i32
  }
  func.func @transform_8(%arg0: i32) -> (i32, i32) {
    %c0_i32 = arith.constant 0 : i32
    %c0_i32_0 = arith.constant 0 : i32
    %c0_i32_1 = arith.constant 0 : i32
    return %c0_i32, %c0_i32_0 : i32, i32
  }
  func.func @transform_9(%arg0: i32) -> (i32, i32) {
    %c0_i32 = arith.constant 0 : i32
    %c0_i32_0 = arith.constant 0 : i32
    %c0_i32_1 = arith.constant 0 : i32
    return %c0_i32, %c0_i32_0 : i32, i32
  }
  func.func @transform_10(%arg0: i32) -> (i32, i32) {
    %c0_i32 = arith.constant 0 : i32
    %c0_i32_0 = arith.constant 0 : i32
    %c0_i32_1 = arith.constant 0 : i32
    return %c0_i32, %c0_i32_0 : i32, i32
  }
  func.func @transform_11(%arg0: i32) -> (i32, i32) {
    %c0_i32 = arith.constant 0 : i32
    %c0_i32_0 = arith.constant 0 : i32
    %c0_i32_1 = arith.constant 0 : i32
    return %c0_i32, %c0_i32_0 : i32, i32
  }
  func.func @transform_12(%arg0: i32) -> (i32, i32) {
    %c0_i32 = arith.constant 0 : i32
    %c0_i32_0 = arith.constant 0 : i32
    %c0_i32_1 = arith.constant 0 : i32
    return %c0_i32, %c0_i32_0 : i32, i32
  }
  func.func @transform_13(%arg0: i32) -> (i32, i32) {
    %c0_i32 = arith.constant 0 : i32
    %c0_i32_0 = arith.constant 0 : i32
    %c0_i32_1 = arith.constant 0 : i32
    return %c0_i32, %c0_i32_0 : i32, i32
  }
  func.func @transform_14(%arg0: i32) -> (i32, i32) {
    %c0_i32 = arith.constant 0 : i32
    %c0_i32_0 = arith.constant 0 : i32
    %c0_i32_1 = arith.constant 0 : i32
    return %c0_i32, %c0_i32_0 : i32, i32
  }
  func.func @transform_15(%arg0: i32) -> (i32, i32) {
    %c0_i32 = arith.constant 0 : i32
    %c0_i32_0 = arith.constant 0 : i32
    %c0_i32_1 = arith.constant 0 : i32
    return %c0_i32, %c0_i32_0 : i32, i32
  }
  func.func @transform_16(%arg0: i32) -> (i32, i32) {
    %c0_i32 = arith.constant 0 : i32
    %c0_i32_0 = arith.constant 0 : i32
    return %arg0, %c0_i32 : i32, i32
  }
  func.func @transform_17(%arg0: i32) -> (i32, i32) {
    %c0_i32 = arith.constant 0 : i32
    %c0_i32_0 = arith.constant 0 : i32
    return %arg0, %c0_i32 : i32, i32
  }
}

</mosaic_0001>

<bundles_post_ra>
// kernel: tpu_custom_call.1
= control target key start
LH: loop header
LB: loop body
LE: loop exit
PB: predicated region body
PF: predicated region fallthrough
CT: control target
= control target key end

     0   :  { %s2009_s0 = inlined_call_operand.vmem [shape: s32[16,1], index: 0, kind: input, shape index: {}]   ;;  %s2010_s1 = inlined_call_operand.<no memory space> [shape: f32[1,1], index: 1, kind: input, shape index: {}]   ;;  %s2011_s2 = inlined_call_operand.hbm [shape: bf16[16,32], index: 2, kind: input, shape index: {}]   ;;  %s2012_s3 = inlined_call_operand.vmem [shape: bf16[128,16], index: 3, kind: input, shape index: {}]   ;;  %s2013_s4 = inlined_call_operand.hbm [shape: bf16[32,128], index: 4, kind: input, shape index: {}]   ;;  %s2014_s5 = inlined_call_operand.vmem [shape: f32[1,128], index: 5, kind: input, shape index: {}]   ;;  %s2015_s6 = inlined_call_operand.vmem [shape: bf16[128,64], index: 6, kind: input, shape index: {}]   ;;  %s2016_s7 = inlined_call_operand.hbm [shape: f32[1,64], index: 7, kind: input, shape index: {}]   ;;  %s2017_s8 = inlined_call_operand.vmem [shape: bf16[16,192], index: 8, kind: input, shape index: {}]   ;;  %s2018_s9 = inlined_call_operand.vmem [shape: f32[1,192], index: 9, kind: input, shape index: {}]   ;;  %s2019_s10 = inlined_call_operand.vmem [shape: bf16[64,192], index: 10, kind: input, shape index: {}]   ;;  %s2020_s11 = inlined_call_operand.vmem [shape: f32[1,192], index: 11, kind: input, shape index: {}]   ;;  %s2021_s12 = inlined_call_operand.vmem [shape: bf16[128,128], index: 12, kind: input, shape index: {}]   ;;  %s2022_s13 = inlined_call_operand.vmem [shape: f32[1,128], index: 13, kind: input, shape index: {}]   ;;  %s2023_s14 = inlined_call_operand.vmem [shape: bf16[128,128], index: 14, kind: input, shape index: {}]   ;;  %s2024_s15 = inlined_call_operand.vmem [shape: f32[1,128], index: 15, kind: input, shape index: {}]   ;;  %s2025_s16 = inlined_call_operand.hbm [shape: f32[16,128], index: 16, kind: output, shape index: {0}]   ;;  %s2026_s17 = inlined_call_operand.hbm [shape: f32[16,128], index: 17, kind: output, shape index: {1}]  }
   0x1   :  { %2028 = sst [smem:[#allocation17_spill]] %s2009_s0 }
   0x2   :  { %2029 = sst [smem:[#allocation18_spill]] %s2010_s1 }
   0x3   :  { %s2030_s26 = sld [smem:[#allocation18_spill]] }
   0x9   :  { %v23_v0 = vstv %s2030_s26 }
   0xa   :  { %24 = vst [vmem:[#allocation3] sm:$0x1] %v23_v0 }
   0xb   :  { %25 = vsyncpa [#allocation5], 0 }
   0xc   :  { %26 = vsyncpa [#allocation8], 0 }
   0xd   :  { %27 = vsyncpa [#allocation6], 0 }
   0xe   :  { %28 = vsyncpa [#allocation12], 0  ;;  %s1464_s27 = smov [#allocation7]   ;;  %s1465_s29 = smov [#allocation4]  }
   0xf   :  { %s52_s28 = sshll.u32 %s1464_s27, 4  ;;  %s38_s0 = sshll.u32 %s1465_s29, 4  ;;  %s53_s28 = int_to_ptr.vmem [resolvable:$true] %s52_s28  ;;  %s1572_s0 = int_to_ptr.vmem [resolvable:$true] %s38_s0 }
  0x10   :  { %s1306_s19 = scalar_lea.hbm %s2013_s4, 256 }
  0x11   :  { %p1307_p0 = scmp.ne.s32.totalorder %s2013_s4, %s1306_s19  ;;  %p1310_p1 = scmp.lt.u32.totalorder %s1306_s19, %s2013_s4 }
  0x13   :  { %p1312_p2 = pnand %p1310_p1, %p1307_p0 }
  0x15   :  { %1315 = shalt.err (!%p1312_p2)
}
  0x16   :  { %s1316_s23 = scalar_lea.vmem %s53_s28, 256  ;;  %p1321_p4 = scmp.lt.s32.totalorder %s53_s28, %s53_s28 }
  0x17   :  { %p1317_p3 = scmp.ne.s32.totalorder %s53_s28, %s1316_s23  ;;  %p1322_p5 = scmp.lt.s32.totalorder %s1316_s23, %s1316_s23 }
  0x19   :  { %p1323_p6 = por %p1322_p5, %p1321_p4 }
  0x1b   :  { %p1324_p7 = pnand %p1323_p6, %p1317_p3 }
  0x1d   :  { %1327 = shalt.err (!%p1324_p7)
}
  0x1e   :  { %s1466_s24 = smov 64   ;;  %s1467_s25 = smov 4  }
  0x1f   :  { %58 = dma.hbm_to_vmem [thread:$0]  %s2013_s4, 256, %s53_s28, [#allocation8], %s1466_s24, %s1466_s24, %s1467_s25  }
  0x20   :  { %s1328_s18 = scalar_lea.hbm %s2011_s2, 128 }
  0x21   :  { %p1329_p8 = scmp.ne.s32.totalorder %s2011_s2, %s1328_s18  ;;  %p1332_p9 = scmp.lt.u32.totalorder %s1328_s18, %s2011_s2 }
  0x23   :  { %p1334_p10 = pnand %p1332_p9, %p1329_p8 }
  0x25   :  { %1337 = shalt.err (!%p1334_p10)
}
  0x26   :  { %s1338_s22 = scalar_lea.vmem %s1572_s0, 128  ;;  %p1343_p12 = scmp.lt.s32.totalorder %s1572_s0, %s1572_s0 }
  0x27   :  { %p1339_p11 = scmp.ne.s32.totalorder %s1572_s0, %s1338_s22  ;;  %p1344_p13 = scmp.lt.s32.totalorder %s1338_s22, %s1338_s22 }
  0x29   :  { %p1345_p0 = por %p1344_p13, %p1343_p12 }
  0x2b   :  { %p1346_p1 = pnand %p1345_p0, %p1339_p11 }
  0x2d   :  { %1349 = shalt.err (!%p1346_p1)
}
  0x2e   :  { %44 = dma.hbm_to_vmem [thread:$0]  %s2011_s2, 128, %s1572_s0, [#allocation5], %s1466_s24, %s1466_s24, %s1467_s25  }
  0x2f   :  { %s1468_s23 = smov [#allocation9]   ;;  %s1350_s30 = scalar_lea.hbm %s2016_s7, 16 }
  0x30   :  { %s69_s26 = sshll.u32 %s1468_s23, 4  ;;  %p1351_p2 = scmp.ne.s32.totalorder %s2016_s7, %s1350_s30  ;;  %s70_s26 = int_to_ptr.vmem [resolvable:$true] %s69_s26 }
  0x31   :  { %p1354_p3 = scmp.lt.u32.totalorder %s1350_s30, %s2016_s7 }
  0x33   :  { %p1356_p4 = pnand %p1354_p3, %p1351_p2 }
  0x35   :  { %1359 = shalt.err (!%p1356_p4)
}
  0x36   :  { %s1360_s21 = scalar_lea.vmem %s70_s26, 16  ;;  %s1364_s2 = scalar_lea.vmem %s70_s26, 32 }
  0x37   :  { %p1361_p5 = scmp.ne.s32.totalorder %s70_s26, %s1360_s21  ;;  %p1365_p6 = scmp.lt.s32.totalorder %s70_s26, %s70_s26 }
  0x38   :  { %p1366_p7 = scmp.lt.s32.totalorder %s1364_s2, %s1360_s21 }
  0x3a   :  { %p1367_p8 = por %p1366_p7, %p1365_p6 }
  0x3c   :  { %p1368_p9 = pnand %p1367_p8, %p1361_p5 }
  0x3e   :  { %1371 = shalt.err (!%p1368_p9)
}
  0x3f   :  { %72 = dma.hbm_to_vmem [thread:$0]  %s2016_s7, 16, %s70_s26, [#allocation8]  }
  0x40   :  { %1436 = dma.done.wait [#allocation5], 128  }
  0x41   :  { %1437 = vsyncadd [#allocation5], 4294967168 }
  0x42   :  { %1438 = dma.done.wait [#allocation8], 272  }
  0x43   :  { %1439 = vsyncadd [#allocation8], 4294967024  ;;  %v1469_v1 = vmov 0.0   ;;  %vm1470_vm0 = vmmov 0   ;;  %v1624_v2 = vld [vmem:[%s2019_s10] sm:$0xff]  ;;  %v1629_v3 = vld [vmem:[%s2019_s10 + $0x8] sm:$0xff]  ;;  %v309_v33 = vlaneseq }
  0x44   :  { %1124 = vmatprep.subr.bf16.mxu0 %v1469_v1  ;;  %1128 = vmatprep.mubr.msk.bf16.mxu0 %vm1470_vm0, %v1469_v1  ;;  %v1634_v4 = vld [vmem:[%s2019_s10 + $0x10] sm:$0xff]  ;;  %v1639_v5 = vld [vmem:[%s2019_s10 + $0x18] sm:$0xff]  ;;  %v1644_v6 = vld [vmem:[%s2019_s10 + $0x20] sm:$0xff]  ;;  %s2031_s7 = sld [smem:[#allocation17_spill]]  ;;  %vm129_vm1 = vcmask 261120   ;;  %v1471_v21 = vmov 0  }
  0x45   :  { %1132 = vmatprep.subr.bf16.mxu1 %v1469_v1  ;;  %1148 = vmatprep.mubr.msk.bf16.mxu1 %vm1470_vm0, %v1469_v1  ;;  %v1649_v7 = vld [vmem:[%s2019_s10 + $0x28] sm:$0xff]  ;;  %v1654_v8 = vld [vmem:[%s2019_s10 + $0x30] sm:$0xff]  ;;  %v1659_v9 = vld [vmem:[%s2019_s10 + $0x38] sm:$0xff]  ;;  %vm369_vm2 = vcmask 130048   ;;  %v1747_v34 = vshrl.u32 %v309_v33, 7  ;;  %vm508_vm3 = vcmask 523264  }
  0x46   :  { %v1664_v10 = vld [vmem:[%s2020_s11] sm:$0x3]  ;;  %v1249_v13 = vld [vmem:[#allocation7] sm:$0xff]   ;;  %v1250_v14 = vld [vmem:[#allocation7 + $0x8] sm:$0xff]  }
  0x47   :  { %1125 = vmatpush3.bf16.msra.mxu0 %v1249_v13  ;;  %v1251_v15 = vld [vmem:[#allocation4] sm:$0xff]   ;;  %v1258_v20 = vld [vmem:[%s2015_s6 + $0x10] sm:$0xff]   ;;  %v1259_v23 = vld [vmem:[%s2015_s6 + $0x18] sm:$0xff]   ;;  %v311_v39 = vsub.s32 0, %v1747_v34  ;;  %v315_v42 = vsub.s32 1, %v1747_v34 }
  0x48   :  { %1126 = vmatprep.subr.bf16.mxu0 %v1469_v1  ;;  %v1254_v16 = vld [vmem:[%s2017_s8 + $0x4] ss:$8 sps:$4 sm:$0xff]   ;;  %v1686_v18 = vld [vmem:[%s2017_s8] ss:$8 sps:$4 sm:$0xff]   ;;  %v1263_v27 = vld [vmem:[%s2012_s3 + $0x10] sm:$0xff]  }
  0x49   :  { %v1255_v17 = vld [vmem:[%s2015_s6] sm:$0xff]   ;;  %v1256_v19 = vld [vmem:[%s2015_s6 + $0x8] sm:$0xff]   ;;  %v1264_v28 = vld [vmem:[%s2015_s6 + $0x30] sm:$0xff]  }
  0x4a   :  { %v1669_v11 = vld [vmem:[%s2031_s7] sm:$0xff]  ;;  %v1674_v12 = vld [vmem:[%s2031_s7 + $0x8] sm:$0xff]  ;;  %1133 = vmatpush3.bf16.msra.mxu1 %v1255_v17  ;;  %v1265_v29 = vld [vmem:[%s2015_s6 + $0x38] sm:$0xff]  }
  0x4b   :  { %1127 = vmatpush3.bf16.msra.mxu0 %v1250_v14  ;;  %1134 = vmatprep.subr.bf16.mxu1 %v1469_v1  ;;  %v1257_v22 = vld [vmem:[%s2012_s3] sm:$0xff]   ;;  %v1260_v25 = vld [vmem:[%s2012_s3 + $0x8] sm:$0xff]   ;;  %v1266_v30 = vld [vmem:[%s2012_s3 + $0x18] sm:$0xff]  }
  0x4c   :  { %394 = vmatprep.subr.bf16.mxu0 %v1254_v16  ;;  %v1261_v24 = vld [vmem:[%s2015_s6 + $0x20] sm:$0xff]   ;;  %v1262_v26 = vld [vmem:[%s2015_s6 + $0x28] sm:$0xff]   ;;  %v1268_v58 = vld [vmem:[%s2012_s3 + $0x30] sm:$0xff]  }
  0x4d   :  { %v1267_v31 = vld [vmem:[%s2012_s3 + $0x20] sm:$0xff]   ;;  %v1269_v32 = vld [vmem:[%s2012_s3 + $0x28] sm:$0xff]  }
  0x4e   :  { %1129 = vmatmul.mubr.msk.bf16.vlgmr.msra.gmra.mrb[0].mxu0 %vm129_vm1, %v1251_v15  ;;  %1135 = vmatpush3.bf16.msra.mxu1 %v1256_v19  ;;  %v1028_v35 = vld [vmem:[%s2014_s5] ss:$0 sm:$0xff]  ;;  %v1270_v15 = vld [vmem:[%s2012_s3 + $0x38] sm:$0xff]   ;;  %s1836_s3 = smov 0  }
  0x4f   :  { %395 = vmatpush1.bf16.msra.mxu0 %v1686_v18  ;;  %426 = vmatprep.mubr.bf16.mxu0 %v1471_v21  ;;  %v307_v41 = vld [vmem:[%s2018_s9] sm:$0x3] }
  0x50   :  { %1136 = vmatprep.subr.bf16.mxu1 %v1469_v1  ;;  %v1759_v47 = vrot.slane %v307_v41, %v311_v39  ;;  %v1763_v48 = vrot.slane %v307_v41, %v315_v42 }
  0x52   :  { %1137 = vmatpush3.bf16.msra.mxu1 %v1258_v20 }
  0x53   :  { %1138 = vmatprep.subr.bf16.mxu1 %v1469_v1 }
  0x56   :  { %1052 = vmatmul.mubr.msk.bf16.vlgmr.msra.gmra.mrb[4].mxu0 %vm369_vm2, %v1257_v22  ;;  %1139 = vmatpush3.bf16.msra.mxu1 %v1259_v23 }
  0x57   :  { %436 = vmatprep.mubr.bf16.mxu0 %v1471_v21  ;;  %1140 = vmatprep.subr.bf16.mxu1 %v1469_v1 }
  0x5a   :  { %1141 = vmatpush3.bf16.msra.mxu1 %v1261_v24 }
  0x5b   :  { %1142 = vmatprep.subr.bf16.mxu1 %v1469_v1 }
  0x5e   :  { %1053 = vmatmul.mubr.msk.bf16.gmra.mrb[8].mxu0 %vm369_vm2, %v1260_v25  ;;  %1143 = vmatpush3.bf16.msra.mxu1 %v1262_v26 }
  0x5f   :  { %446 = vmatprep.mubr.bf16.mxu0 %v1471_v21  ;;  %1144 = vmatprep.subr.bf16.mxu1 %v1469_v1 }
  0x62   :  { %1145 = vmatpush3.bf16.msra.mxu1 %v1264_v28 }
  0x63   :  { %1146 = vmatprep.subr.bf16.mxu1 %v1469_v1 }
  0x66   :  { %1054 = vmatmul.mubr.msk.bf16.gmra.mrb[12].mxu0 %vm369_vm2, %v1263_v27  ;;  %1147 = vmatpush3.bf16.msra.mxu1 %v1265_v29 }
  0x67   :  { %456 = vmatprep.mubr.bf16.mxu0 %v1471_v21  ;;  %1192 = vmatprep.subr.bf16.mxu1 %v1254_v16 }
  0x6e   :  { %1055 = vmatmul.mubr.msk.bf16.gmra.mrb[16].mxu0 %vm369_vm2, %v1266_v30 }
  0x6f   :  { %466 = vmatprep.mubr.bf16.mxu0 %v1471_v21 }
  0x76   :  { %1056 = vmatmul.mubr.msk.bf16.gmra.mrb[20].mxu0 %vm369_vm2, %v1267_v31 }
  0x77   :  { %476 = vmatprep.mubr.bf16.mxu0 %v1471_v21 }
  0x7e   :  { %1057 = vmatmul.mubr.msk.bf16.gmra.mrb[24].mxu0 %vm369_vm2, %v1269_v32 }
 0x121   :  { %v167_v36 = vpop.f32.mrb[0].mxu0 }
 0x122   :  { %v168_v37 = vadd.f32 %v1028_v35, %v167_v36  ;;  %v1130_v38 = vpop.f32.mrb[1].mxu0 }
 0x123   :  { %v170_v40 = vpop.f32.mrb[2].mxu0 }
 0x124   :  { %v171_v43 = vadd.f32 %v1028_v35, %v170_v40  ;;  %v1131_v44 = vpop.f32.mrb[3].mxu0  ;;  %v174_v45 = vmax.f32 %v168_v37, 0.0 }
 0x126   :  { %v175_v46 = vmax.f32 %v171_v43, 0.0 }
 0x128   :  { %v176_v49 = vpack.c.bf16 %v175_v46, %v174_v45 }
 0x129   :  { %v428_v50 = vpop.f32.mrb[4].mxu0 }
 0x12a   :  { %1149 = vmatmul.mubr.bf16.vlgmr.msra.gmra.mrb[0].mxu1 %v176_v49  ;;  %v429_v51 = vadd.f32 %v428_v50, %v1759_v47  ;;  %v430_v52 = vpop.f32.mrb[5].mxu0 }
 0x12b   :  { %1193 = vmatpush1.bf16.msra.mxu1 %v1686_v18  ;;  %486 = vmatprep.mubr.bf16.mxu1 %v1471_v21  ;;  %v431_v53 = vadd.f32 %v430_v52, %v1763_v48  ;;  %v432_v54 = vpop.f32.mrb[6].mxu0 }
 0x12c   :  { %507 = vst [vmem:[#allocation2] sm:$0xff] %v429_v51  ;;  %v433_v55 = vadd.f32 %v432_v54, %v1759_v47  ;;  %v434_v56 = vpop.f32.mrb[7].mxu0  ;;  %v1033_v54 = vld [vmem:[#allocation9] ss:$0 sm:$0xff] }
 0x12d   :  { %509 = vst.msk [vmem:[#allocation2 + $0x8] sm:$0xff] %vm508_vm3, %v431_v53  ;;  %v435_v57 = vadd.f32 %v434_v56, %v1763_v48 }
 0x12e   :  { %510 = vst [vmem:[#allocation2 + $0x10] sm:$0xff] %v433_v55 }
 0x12f   :  { %511 = vst.msk [vmem:[#allocation2 + $0x18] sm:$0xff] %vm508_vm3, %v435_v57 }
 0x131   :  { %v438_v59 = vpop.f32.mrb[8].mxu0 }
 0x132   :  { %1058 = vmatmul.mubr.msk.bf16.vlgmr.msra.gmra.mrb[4].mxu1 %vm369_vm2, %v1268_v58  ;;  %v439_v60 = vadd.f32 %v438_v59, %v1759_v47  ;;  %v440_v61 = vpop.f32.mrb[9].mxu0 }
 0x133   :  { %496 = vmatprep.mubr.bf16.mxu1 %v1471_v21  ;;  %v441_v62 = vadd.f32 %v440_v61, %v1763_v48  ;;  %v442_v63 = vpop.f32.mrb[10].mxu0 }
 0x134   :  { %512 = vst [vmem:[#allocation2 + $0x20] sm:$0xff] %v439_v60  ;;  %v443_v0 = vadd.f32 %v442_v63, %v1759_v47  ;;  %v444_v13 = vpop.f32.mrb[11].mxu0 }
 0x135   :  { %513 = vst.msk [vmem:[#allocation2 + $0x28] sm:$0xff] %vm508_vm3, %v441_v62  ;;  %v445_v14 = vadd.f32 %v444_v13, %v1763_v48 }
 0x136   :  { %514 = vst [vmem:[#allocation2 + $0x30] sm:$0xff] %v443_v0 }
 0x137   :  { %515 = vst.msk [vmem:[#allocation2 + $0x38] sm:$0xff] %vm508_vm3, %v445_v14 }
 0x139   :  { %v448_v16 = vpop.f32.mrb[12].mxu0 }
 0x13a   :  { %1059 = vmatmul.mubr.msk.bf16.gmra.mrb[8].mxu1 %vm369_vm2, %v1270_v15  ;;  %v449_v17 = vadd.f32 %v448_v16, %v1759_v47  ;;  %v450_v18 = vpop.f32.mrb[13].mxu0 }
 0x13b   :  { %v451_v19 = vadd.f32 %v450_v18, %v1763_v48  ;;  %v452_v20 = vpop.f32.mrb[14].mxu0 }
 0x13c   :  { %516 = vst [vmem:[#allocation2 + $0x40] sm:$0xff] %v449_v17  ;;  %v453_v22 = vadd.f32 %v452_v20, %v1759_v47  ;;  %v454_v23 = vpop.f32.mrb[15].mxu0 }
 0x13d   :  { %517 = vst.msk [vmem:[#allocation2 + $0x48] sm:$0xff] %vm508_vm3, %v451_v19  ;;  %v455_v24 = vadd.f32 %v454_v23, %v1763_v48 }
 0x13e   :  { %518 = vst [vmem:[#allocation2 + $0x50] sm:$0xff] %v453_v22 }
 0x13f   :  { %519 = vst.msk [vmem:[#allocation2 + $0x58] sm:$0xff] %vm508_vm3, %v455_v24 }
 0x141   :  { %v458_v25 = vpop.f32.mrb[16].mxu0 }
 0x142   :  { %v459_v26 = vadd.f32 %v458_v25, %v1759_v47  ;;  %v460_v27 = vpop.f32.mrb[17].mxu0 }
 0x143   :  { %v461_v28 = vadd.f32 %v460_v27, %v1763_v48  ;;  %v462_v29 = vpop.f32.mrb[18].mxu0  ;;  %v1830_v27 = vmov 0.0  }
 0x144   :  { %520 = vst [vmem:[#allocation2 + $0x60] sm:$0xff] %v459_v26  ;;  %v463_v30 = vadd.f32 %v462_v29, %v1759_v47  ;;  %v464_v31 = vpop.f32.mrb[19].mxu0  ;;  %v1828_v26 = vmov 0.0   ;;  %v1834_v29 = vmov 0.0  }
 0x145   :  { %521 = vst.msk [vmem:[#allocation2 + $0x68] sm:$0xff] %vm508_vm3, %v461_v28  ;;  %v465_v32 = vadd.f32 %v464_v31, %v1763_v48  ;;  %v1832_v28 = vmov 0.0  }
 0x146   :  { %522 = vst [vmem:[#allocation2 + $0x70] sm:$0xff] %v463_v30 }
 0x147   :  { %523 = vst.msk [vmem:[#allocation2 + $0x78] sm:$0xff] %vm508_vm3, %v465_v32 }
 0x149   :  { %v468_v33 = vpop.f32.mrb[20].mxu0 }
 0x14a   :  { %v469_v35 = vadd.f32 %v468_v33, %v1759_v47  ;;  %v470_v36 = vpop.f32.mrb[21].mxu0 }
 0x14b   :  { %v471_v37 = vadd.f32 %v470_v36, %v1763_v48  ;;  %v472_v38 = vpop.f32.mrb[22].mxu0 }
 0x14c   :  { %524 = vst [vmem:[#allocation2 + $0x80] sm:$0xff] %v469_v35  ;;  %v473_v40 = vadd.f32 %v472_v38, %v1759_v47  ;;  %v474_v41 = vpop.f32.mrb[23].mxu0 }
 0x14d   :  { %525 = vst.msk [vmem:[#allocation2 + $0x88] sm:$0xff] %vm508_vm3, %v471_v37  ;;  %v475_v43 = vadd.f32 %v474_v41, %v1763_v48 }
 0x14e   :  { %526 = vst [vmem:[#allocation2 + $0x90] sm:$0xff] %v473_v40 }
 0x14f   :  { %527 = vst.msk [vmem:[#allocation2 + $0x98] sm:$0xff] %vm508_vm3, %v475_v43 }
 0x151   :  { %v478_v44 = vpop.f32.mrb[24].mxu0 }
 0x152   :  { %v479_v45 = vadd.f32 %v478_v44, %v1759_v47  ;;  %v480_v46 = vpop.f32.mrb[25].mxu0 }
 0x153   :  { %v481_v49 = vadd.f32 %v480_v46, %v1763_v48  ;;  %v482_v50 = vpop.f32.mrb[26].mxu0 }
 0x154   :  { %528 = vst [vmem:[#allocation2 + $0xa0] sm:$0xff] %v479_v45  ;;  %v483_v51 = vadd.f32 %v482_v50, %v1759_v47  ;;  %v484_v52 = vpop.f32.mrb[27].mxu0 }
 0x155   :  { %529 = vst.msk [vmem:[#allocation2 + $0xa8] sm:$0xff] %vm508_vm3, %v481_v49  ;;  %v485_v53 = vadd.f32 %v484_v52, %v1763_v48 }
 0x156   :  { %530 = vst [vmem:[#allocation2 + $0xb0] sm:$0xff] %v483_v51 }
 0x157   :  { %531 = vst.msk [vmem:[#allocation2 + $0xb8] sm:$0xff] %vm508_vm3, %v485_v53 }
 0x1fd   :  { %v282_v55 = vpop.f32.mrb[0].mxu1 }
 0x1fe   :  { %v1812_v56 = vadd.f32 %v1033_v54, %v282_v55  ;;  %v1150_v57 = vpop.f32.mrb[1].mxu1 }
 0x1ff   :  { %v285_v58 = vpop.f32.mrb[2].mxu1 }
 0x200   :  { %v1814_v59 = vadd.f32 %v1033_v54, %v285_v58  ;;  %v1151_v60 = vpop.f32.mrb[3].mxu1 }
 0x205   :  { %v488_v61 = vpop.f32.mrb[4].mxu1 }
 0x206   :  { %v489_v62 = vadd.f32 %v488_v61, %v1759_v47  ;;  %v490_v63 = vpop.f32.mrb[5].mxu1 }
 0x207   :  { %v491_v0 = vadd.f32 %v490_v63, %v1763_v48  ;;  %v492_v13 = vpop.f32.mrb[6].mxu1 }
 0x208   :  { %532 = vst [vmem:[#allocation2 + $0xc0] sm:$0xff] %v489_v62  ;;  %v493_v14 = vadd.f32 %v492_v13, %v1759_v47  ;;  %v494_v15 = vpop.f32.mrb[7].mxu1 }
 0x209   :  { %533 = vst.msk [vmem:[#allocation2 + $0xc8] sm:$0xff] %vm508_vm3, %v491_v0  ;;  %v495_v16 = vadd.f32 %v494_v15, %v1763_v48 }
 0x20a   :  { %534 = vst [vmem:[#allocation2 + $0xd0] sm:$0xff] %v493_v14 }
 0x20b   :  { %535 = vst.msk [vmem:[#allocation2 + $0xd8] sm:$0xff] %vm508_vm3, %v495_v16 }
 0x20d   :  { %v498_v17 = vpop.f32.mrb[8].mxu1 }
 0x20e   :  { %v499_v18 = vadd.f32 %v498_v17, %v1759_v47  ;;  %v500_v19 = vpop.f32.mrb[9].mxu1 }
 0x20f   :  { %v501_v20 = vadd.f32 %v500_v19, %v1763_v48  ;;  %v502_v22 = vpop.f32.mrb[10].mxu1 }
 0x210   :  { %536 = vst [vmem:[#allocation2 + $0xe0] sm:$0xff] %v499_v18  ;;  %v503_v23 = vadd.f32 %v502_v22, %v1759_v47  ;;  %v504_v24 = vpop.f32.mrb[11].mxu1 }
 0x211   :  { %537 = vst.msk [vmem:[#allocation2 + $0xe8] sm:$0xff] %vm508_vm3, %v501_v20  ;;  %v505_v25 = vadd.f32 %v504_v24, %v1763_v48 }
 0x212   :  { %538 = vst [vmem:[#allocation2 + $0xf0] sm:$0xff] %v503_v23 }
 0x213   :  { %539 = vst.msk [vmem:[#allocation2 + $0xf8] sm:$0xff] %vm508_vm3, %v505_v25 }
 0x214 LB: > { %v1064_v47 = vcombine.high %v1624_v2, %v1629_v3  ;;  %v1063_v48 = vcombine.low %v1624_v2, %v1629_v3  ;;  %v1066_v30 = vcombine.high %v1634_v4, %v1639_v5  ;;  %v571_v31 = vpack.c.bf16 %v1454_v28, %v1458_v29  ;;  %s1472_s25 = smov 64   ;;  %s1060_s22 = sshll.u32 %s1462_s3, 4  ;;  %s1462_s3 = sphi %s1836_s3, %s556_s3   ;;  %v1458_v29 = vphi %v1834_v29, %v706_v29   ;;  %v1454_v28 = vphi %v1832_v28, %v707_v28   ;;  %v1450_v27 = vphi %v1830_v27, %v2033_v27   ;;  %v1446_v26 = vphi %v1828_v26, %v2032_v26  }
 0x215   : > { %v1065_v32 = vcombine.low %v1634_v4, %v1639_v5  ;;  %v1068_v33 = vcombine.high %v1644_v6, %v1649_v7  ;;  %v1473_v35 = vmov 0   ;;  %v1067_v36 = vcombine.low %v1644_v6, %v1649_v7  ;;  %s562_s7 = sshra.s32 %s1060_s22, 3 }
 0x216   : > { %629 = vmatprep.subr.bf16.mxu0 %v1064_v47  ;;  %584 = vrot.lane.b32.xlu0 %v571_v31, %s1472_s25  ;;  %v1070_v37 = vcombine.high %v1654_v8, %v1659_v9  ;;  %v1069_v38 = vcombine.low %v1654_v8, %v1659_v9  ;;  %v708_v41 = vstv %s1462_s3  ;;  %v1474_v43 = vmov 0.0   ;;  %s1093_s4 = sshll.u32 %s562_s7, 4  ;;  %s556_s3 = sadd.s32 1, %s1462_s3  }
 0x217   : > { %630 = vmatpush1.bf16.msra.mxu0 %v1063_v48  ;;  %661 = vmatprep.mubr.bf16.mxu0 %v1473_v35  ;;  %vm709_vm4 = vcmp.lt.s32.totalorder %v708_v41, %v1669_v11  ;;  %vm710_vm5 = vcmp.lt.s32.totalorder %v708_v41, %v1674_v12  ;;  %v576_v49 = vrot.slane %v1664_v10, %v311_v39  ;;  %s566_s28 = scalar_lea.vmem [#allocation2], %s1093_s4  ;;  %p553_p10 = scmp.ge.s32.totalorder %s556_s3, 8  }
 0x218   : > { %631 = vmatprep.subr.bf16.mxu0 %v1066_v30  ;;  %1271 = vset.pattern.permute.xlu0 %v1473_v35  ;;  %v1072_v44 = vsel %vm709_vm4, 1.0, %v1474_v43  ;;  %v1073_v45 = vsel %vm710_vm5, 1.0, %v1474_v43  ;;  %v580_v18 = vrot.slane %v1664_v10, %v315_v42  ;;  %v1291_v2 = vld [vmem:[%s2021_s12 + $0x8] sm:$0xff] (%p553_p10)   ;;  %v1292_v3 = vld [vmem:[%s2021_s12 + $0x10] sm:$0xff] (%p553_p10)   ;;  %v1298_v4 = vld [vmem:[%s2023_s14] sm:$0xff] (%p553_p10)   ;;  %s1475_s19 = smov (%p553_p10), [#allocation11]  }
 0x219   : > { %v1272_v46 = vpack.i.bf16 %v1073_v45, %v1072_v44  ;;  %1172 = vmatprep.subr.bf16.mxu1 (%p553_p10), %v1469_v1  ;;  %1188 = vmatprep.mubr.msk.bf16.mxu1 (%p553_p10), %vm1470_vm0, %v1469_v1  ;;  %v1293_v5 = vld [vmem:[%s2021_s12 + $0x18] sm:$0xff] (%p553_p10)   ;;  %v1299_v6 = vld [vmem:[%s2023_s14 + $0x8] sm:$0xff] (%p553_p10)   ;;  %v1294_v7 = vld [vmem:[%s2021_s12 + $0x20] sm:$0xff] (%p553_p10)   ;;  %s992_s1 = sshll.u32 (%p553_p10), %s1475_s19, 4  ;;  %s993_s1 = int_to_ptr.vmem [resolvable:$true] %s992_s1 }
 0x21a   : > { %v567_v50 = vld [vmem:[%s566_s28] sm:$0xff]  ;;  %v569_v54 = vld [vmem:[%s566_s28 + $0x10] sm:$0xff]  ;;  %v568_v22 = vld [vmem:[%s566_s28 + $0x8] sm:$0xff]  ;;  %1173 = vmatpush3.bf16.msra.mxu1 (%p553_p10), %v1298_v4  ;;  %s1372_s6 = scalar_lea.vmem (%p553_p10), %s993_s1, 256  ;;  %p1377_p12 = scmp.lt.s32.totalorder (%p553_p10), %s993_s1, %s993_s1 }
 0x21b   : > { %632 = vmatpush1.bf16.msra.mxu0 %v1065_v32  ;;  %1273 = vperm.xlu0 %1271, %v1272_v46   ;;  %v570_v47 = vld [vmem:[%s566_s28 + $0x18] sm:$0xff]  ;;  %v1300_v8 = vld [vmem:[%s2023_s14 + $0x10] sm:$0xff] (%p553_p10)   ;;  %v1295_v9 = vld [vmem:[%s2021_s12 + $0x28] sm:$0xff] (%p553_p10)   ;;  %p1373_p11 = scmp.ne.s32.totalorder (%p553_p10), %s993_s1, %s1372_s6  ;;  %p1378_p13 = scmp.lt.s32.totalorder (%p553_p10), %s1372_s6, %s1372_s6 }
 0x21c   : > { %633 = vmatprep.subr.bf16.mxu0 %v1068_v33  ;;  %1174 = vmatprep.subr.bf16.mxu1 (%p553_p10), %v1469_v1  ;;  %v1301_v10 = vld [vmem:[%s2023_s14 + $0x18] sm:$0xff] (%p553_p10)   ;;  %v1296_v11 = vld [vmem:[%s2021_s12 + $0x30] sm:$0xff] (%p553_p10)   ;;  %v1302_v12 = vld [vmem:[%s2023_s14 + $0x20] sm:$0xff] (%p553_p10)  }
 0x21d   :  { %v1303_v34 = vld [vmem:[%s2023_s14 + $0x28] sm:$0xff] (%p553_p10)   ;;  %p1379_p0 = por (%p553_p10), %p1378_p13, %p1377_p12 }
 0x21e   :  { %1175 = vmatpush3.bf16.msra.mxu1 (%p553_p10), %v1299_v6 }
 0x21f   : > { %634 = vmatpush1.bf16.msra.mxu0 %v1067_v36  ;;  %1289 = vset.pattern.permute.xlu0 (%p553_p10), %v1471_v21  ;;  %v1297_v21 = vld [vmem:[%s2021_s12 + $0x38] sm:$0xff] (%p553_p10)   ;;  %p1380_p1 = pnand (%p553_p10), %p1379_p0, %p1373_p11 }
 0x220   : > { %635 = vmatprep.subr.bf16.mxu0 %v1070_v37  ;;  %1176 = vmatprep.subr.bf16.mxu1 (%p553_p10), %v1469_v1 }
 0x222   :  { %1177 = vmatpush3.bf16.msra.mxu1 (%p553_p10), %v1300_v8 }
 0x223   : > { %636 = vmatpush1.bf16.msra.mxu0 %v1069_v38  ;;  %1178 = vmatprep.subr.bf16.mxu1 (%p553_p10), %v1469_v1 }
 0x224   :  { %1152 = vmatprep.subr.bf16.mxu0 (%p553_p10), %v1469_v1 }
 0x226   :  { %1179 = vmatpush3.bf16.msra.mxu1 (%p553_p10), %v1301_v10 }
 0x227   :  { %1180 = vmatprep.subr.bf16.mxu1 (%p553_p10), %v1469_v1 }
 0x22a   :  { %1181 = vmatpush3.bf16.msra.mxu1 (%p553_p10), %v1302_v12 }
 0x22b   :  { %1182 = vmatprep.subr.bf16.mxu1 (%p553_p10), %v1469_v1 }
 0x22e   :  { %1183 = vmatpush3.bf16.msra.mxu1 (%p553_p10), %v1303_v34 }
 0x22f   :  { %1184 = vmatprep.subr.bf16.mxu1 (%p553_p10), %v1469_v1 }
 0x288   : > { %v585_v40 = vpop.permute.xlu0 %584 }
 0x289   : > { %1071 = vmatmul.mubr.msk.bf16.vlgmr.msra.gmra.mrb[0].mxu0 %vm508_vm3, %v585_v40 }
 0x28a   :  { %1168 = vmatprep.mubr.msk.bf16.mxu0 (%p553_p10), %vm1470_vm0, %v1469_v1 }
 0x29a   : > { %v1274_v35 = vpop.permute.xlu0 %1273 }
 0x29b   : > { %v1275_v41 = vunpack.i.l.bf16 %v1274_v35  ;;  %v1276_v46 = vunpack.i.h.bf16 %v1274_v35 }
 0x35c   : > { %v663_v51 = vpop.f32.mrb[0].mxu0 }
 0x35d   : > { %v664_v52 = vadd.f32 %v663_v51, %v576_v49  ;;  %v665_v53 = vpop.f32.mrb[1].mxu0 }
 0x35e   : > { %v667_v55 = vpop.f32.mrb[2].mxu0  ;;  %v666_v19 = vadd.f32 %v665_v53, %v580_v18 }
 0x35f   : > { %v672_v57 = vadd.f32 %v664_v52, %v567_v50  ;;  %v668_v58 = vadd.f32 %v667_v55, %v576_v49  ;;  %v669_v60 = vpop.f32.mrb[3].mxu0  ;;  %v1290_v55 = vld [vmem:[%s2021_s12] sm:$0xff] (%p553_p10)  }
 0x360   : > { %v670_v24 = vadd.f32 %v669_v60, %v580_v18  ;;  %1153 = vmatpush3.bf16.msra.mxu0 (%p553_p10), %v1290_v55 }
 0x361   : > { %v674_v61 = vsub.f32 0.0, %v672_v57  ;;  %v673_v62 = vadd.f32 %v668_v58, %v569_v54  ;;  %v1074_v54 = vld [vmem:[#allocation3] ss:$0 sm:$0xff] (%p553_p10)  ;;  %1154 = vmatprep.subr.bf16.mxu0 (%p553_p10), %v1469_v1  ;;  %v1304_v57 = vld [vmem:[%s2023_s14 + $0x30] sm:$0xff] (%p553_p10)   ;;  %v1305_v58 = vld [vmem:[%s2023_s14 + $0x38] sm:$0xff] (%p553_p10)  }
 0x362   :  { %736 = vperm.xlu0 (%p553_p10), %1289, %v1074_v54   ;;  %1185 = vmatpush3.bf16.msra.mxu1 (%p553_p10), %v1304_v57 }
 0x363   : > { %v676_v63 = vmul.f32 1.442695, %v674_v61  ;;  %v675_v0 = vsub.f32 0.0, %v673_v62  ;;  %1186 = vmatprep.subr.bf16.mxu1 (%p553_p10), %v1469_v1 }
 0x364   :  { %1155 = vmatpush3.bf16.msra.mxu0 (%p553_p10), %v1291_v2 }
 0x365   : > { %1277 = vpow2.f32 %v676_v63  ;;  %v678_v13 = vmul.f32 1.442695, %v675_v0  ;;  %1156 = vmatprep.subr.bf16.mxu0 (%p553_p10), %v1469_v1 }
 0x366   :  { %1187 = vmatpush3.bf16.msra.mxu1 (%p553_p10), %v1305_v58 }
 0x367   : > { %1279 = vpow2.f32 %v678_v13 }
 0x368   :  { %1157 = vmatpush3.bf16.msra.mxu0 (%p553_p10), %v1292_v3 }
 0x369   :  { %1158 = vmatprep.subr.bf16.mxu0 (%p553_p10), %v1469_v1 }
 0x36c   :  { %1159 = vmatpush3.bf16.msra.mxu0 (%p553_p10), %v1293_v5 }
 0x36d   :  { %1160 = vmatprep.subr.bf16.mxu0 (%p553_p10), %v1469_v1 }
 0x36f   : > { %v1278_v14 = vpop.eup %1277 }
 0x370   : > { %v680_v15 = vadd.f32 1.0, %v1278_v14  ;;  %1161 = vmatpush3.bf16.msra.mxu0 (%p553_p10), %v1294_v7 }
 0x371   : > { %v1280_v16 = vpop.eup %1279  ;;  %1162 = vmatprep.subr.bf16.mxu0 (%p553_p10), %v1469_v1 }
 0x372   : > { %1281 = vrcp.f32 %v680_v15  ;;  %v681_v17 = vadd.f32 1.0, %v1280_v16 }
 0x374   : > { %1283 = vrcp.f32 %v681_v17  ;;  %1163 = vmatpush3.bf16.msra.mxu0 (%p553_p10), %v1295_v9 }
 0x375   :  { %1164 = vmatprep.subr.bf16.mxu0 (%p553_p10), %v1469_v1 }
 0x378   :  { %1165 = vmatpush3.bf16.msra.mxu0 (%p553_p10), %v1296_v11 }
 0x379   :  { %1166 = vmatprep.subr.bf16.mxu0 (%p553_p10), %v1469_v1 }
 0x37c   : > { %v1282_v20 = vpop.eup %1281  ;;  %1167 = vmatpush3.bf16.msra.mxu0 (%p553_p10), %v1297_v21 }
 0x37d   : > { %v686_v23 = vmul.f32 %v1282_v20, %v666_v19  ;;  %v692_v36 = vsub.f32 1.0, %v1282_v20  ;;  %v704_v38 = vmul.f32 %v1458_v29, %v1282_v20 }
 0x37e   : > { %v1284_v25 = vpop.eup %1283 }
 0x37f   : > { %v688_v48 = vadd.f32 %v686_v23, %v568_v22  ;;  %v687_v30 = vmul.f32 %v1284_v25, %v670_v24  ;;  %v693_v43 = vsub.f32 1.0, %v1284_v25  ;;  %v705_v44 = vmul.f32 %v1454_v28, %v1284_v25 }
 0x381   : > { %1285 = vtanh.f32 %v688_v48  ;;  %v689_v31 = vadd.f32 %v687_v30, %v570_v47 }
 0x383   : > { %1287 = vtanh.f32 %v689_v31 }
 0x38b   : > { %v1286_v32 = vpop.eup %1285 }
 0x38c   : > { %696 = vrot.lane.b32.xlu1 %v1286_v32, %s1472_s25 }
 0x38d   : > { %v1288_v33 = vpop.eup %1287 }
 0x390   : > { %698 = vrot.lane.b32.xlu1 %v1288_v33, %s1472_s25 }
 0x3e1   :  { %v737_v39 = vpop.permute.xlu0 (%p553_p10), %736 }
 0x3fe   : > { %v697_v37 = vpop.permute.xlu1 %696 }
 0x3ff   : > { %v702_v40 = vmul.f32 %v697_v37, %v692_v36 }
 0x401   : > { %v706_v29 = vadd.f32 %v704_v38, %v702_v40  }
 0x402   : > { %v699_v45 = vpop.permute.xlu1 %698 }
 0x403   : > { %v725_v49 = vmul.f32 %v1275_v41, %v706_v29  ;;  %v703_v50 = vmul.f32 %v699_v45, %v693_v43 }
 0x405   : > { %v727_v51 = vadd.f32 %v1450_v27, %v725_v49   ;;  %v707_v28 = vadd.f32 %v705_v44, %v703_v50   ;;  %555 = sbr.rel (!%p553_p10) target bundleno = 532 (0x214), region = 112 }
 0x407   : > { %v726_v52 = vmul.f32 %v1276_v46, %v707_v28  ;;  %v2033_v27 = vmov %v727_v51  ;;  %v739_v42 = vmul.f32 (%p553_p10), %v737_v39, %v727_v51 }
 0x409   : > { %v728_v53 = vadd.f32 %v1446_v26, %v726_v52   ;;  %v741_v27 = vsel (%p553_p10), %vm508_vm3, %v1812_v56, %v739_v42  ;;  %v1075_v56 = vld [vmem:[%s2022_s13] ss:$0 sm:$0xff] (%p553_p10) }
 0x40a   :  { %743 = vst [vmem:[#allocation11] sm:$0xff] (%p553_p10), %v741_v27 }
 0x40b   : > { %v2032_v26 = vmov %v728_v53 }
 0x40c   :  { %v740_v26 = vmul.f32 %v737_v39, %v728_v53 }
 0x40e   :  { %v742_v28 = vsel %vm508_vm3, %v1814_v59, %v740_v26 }
 0x40f   :  { %744 = vst [vmem:[#allocation11 + $0x8] sm:$0xff] %v742_v28  ;;  %v745_v29 = vpack.c.bf16 %v742_v28, %v741_v27 }
 0x411   :  { %1169 = vmatmul.mubr.bf16.vlgmr.msra.gmra.mrb[0].mxu0 %v745_v29 }
 0x4e4   :  { %v851_v59 = vpop.f32.mrb[0].mxu0 }
 0x4e5   :  { %v852_v60 = vadd.f32 %v1075_v56, %v851_v59  ;;  %v1170_v61 = vpop.f32.mrb[1].mxu0 }
 0x4e6   :  { %v854_v62 = vpop.f32.mrb[2].mxu0 }
 0x4e7   :  { %v855_v63 = vadd.f32 %v1075_v56, %v854_v62  ;;  %v1171_v0 = vpop.f32.mrb[3].mxu0  ;;  %v858_v13 = vmax.f32 %v852_v60, 0.0 }
 0x4e9   :  { %v859_v14 = vmax.f32 %v855_v63, 0.0 }
 0x4eb   :  { %v860_v15 = vpack.c.bf16 %v859_v14, %v858_v13 }
 0x4ed   :  { %1189 = vmatmul.mubr.bf16.vlgmr.msra.gmra.mrb[0].mxu1 %v860_v15 }
 0x4ee   :  { %1383 = shalt.err (!%p1380_p1)
}
 0x4ef   :  { %s1384_s8 = scalar_lea.hbm %s2026_s17, 256 }
 0x4f0   :  { %p1385_p2 = scmp.ne.s32.totalorder %s2026_s17, %s1384_s8  ;;  %p1388_p3 = scmp.lt.u32.totalorder %s1384_s8, %s2026_s17 }
 0x4f2   :  { %p1390_p4 = pnand %p1388_p3, %p1385_p2 }
 0x4f4   :  { %1393 = shalt.err (!%p1390_p4)
}
 0x4f5   :  { %s1476_s9 = smov 128   ;;  %s1477_s0 = smov 8   ;;  %v1084_v1 = vld [vmem:[%s2024_s15] ss:$0 sm:$0xff] }
 0x4f6   :  { %998 = dma.vmem_to_hbm [thread:$0]  %s993_s1, 256, %s2026_s17, [#allocation12], %s1476_s9, %s1476_s9, %s1477_s0  }
 0x4f7   :  { %s1478_s7 = smov [#allocation10]  }
 0x4f8   :  { %s980_s4 = sshll.u32 %s1478_s7, 4  ;;  %s981_s4 = int_to_ptr.vmem [resolvable:$true] %s980_s4 }
 0x4f9   :  { %s1394_s28 = scalar_lea.vmem %s981_s4, 256  ;;  %p1399_p6 = scmp.lt.s32.totalorder %s981_s4, %s981_s4 }
 0x4fa   :  { %p1395_p5 = scmp.ne.s32.totalorder %s981_s4, %s1394_s28  ;;  %p1400_p7 = scmp.lt.s32.totalorder %s1394_s28, %s1394_s28 }
 0x4fc   :  { %p1401_p8 = por %p1400_p7, %p1399_p6 }
 0x4fe   :  { %p1402_p9 = pnand %p1401_p8, %p1395_p5 }
 0x5c0   :  { %v966_v16 = vpop.f32.mrb[0].mxu1 }
 0x5c1   :  { %v967_v17 = vadd.f32 %v1084_v1, %v966_v16  ;;  %v1190_v18 = vpop.f32.mrb[1].mxu1 }
 0x5c2   :  { %v969_v19 = vpop.f32.mrb[2].mxu1 }
 0x5c3   :  { %973 = vst [vmem:[#allocation10] sm:$0xff] %v967_v17  ;;  %v970_v20 = vadd.f32 %v1084_v1, %v969_v19  ;;  %v1191_v22 = vpop.f32.mrb[3].mxu1 }
 0x5c5   :  { %974 = vst [vmem:[#allocation10 + $0x8] sm:$0xff] %v970_v20 }
 0x5c6   :  { %1405 = shalt.err (!%p1402_p9)
}
 0x5c7   :  { %s1406_s10 = scalar_lea.hbm %s2025_s16, 256 }
 0x5c8   :  { %p1407_p10 = scmp.ne.s32.totalorder %s2025_s16, %s1406_s10  ;;  %p1410_p11 = scmp.lt.u32.totalorder %s1406_s10, %s2025_s16 }
 0x5ca   :  { %p1412_p12 = pnand %p1410_p11, %p1407_p10 }
 0x5cc   :  { %1415 = shalt.err (!%p1412_p12)
}
 0x5cd   :  { %986 = dma.vmem_to_hbm [thread:$0]  %s981_s4, 256, %s2025_s16, [#allocation6], %s1476_s9, %s1476_s9, %s1477_s0  }
 0x5ce   :  { %1440 = dma.done.wait [#allocation6], 256  }
 0x5cf   :  { %1441 = vsyncadd [#allocation6], 4294967040 }
 0x5d0   :  { %1442 = dma.done.wait [#allocation12], 256  }
 0x5d1   :  { %1443 = vsyncadd [#allocation12], 4294967040 }
 0x5d2   :  { %1005 = vsyncpa [#allocation5], 1 }
 0x5d3   :  { %1006 = vsyncpa [#allocation8], 1 }
 0x5d4   :  { %1007 = vsyncpa [#allocation6], 1 }
 0x5d5   :  { %1008 = vsyncpa [#allocation12], 1 }

</bundles_post_ra>
